<compile_context>
chip_gen: v5e
topology: v5e:2x2
jax: 0.10.0
libtpu: 0.0.40
codegen_flags: <defaults>
</compile_context>

<pallas_src>
import functools

import jax
import jax.numpy as jnp
from jax.experimental import pallas as pl
from jax.experimental.pallas import tpu as pltpu

_LANE = 128
_SUBLANE = 8
_NUM_CLASSES = 2


def _round_up(x, m):
    return (x + m - 1) // m * m


def _choose_tiling(n_batch, dr, rows_per_block=None, *, vmem_budget_bytes=16 << 20):
    """Pick (rows_per_block R, padded_rows Drp, num_k_blocks KT) for Dr rows."""
    if rows_per_block is not None:
        r = int(rows_per_block)
        assert r == dr or r % _SUBLANE == 0, "rows_per_block must be 8-aligned"
        kt = pl.cdiv(dr, r)
        return r, kt * r, kt

    # Double-buffered f32 VMEM per grid step: x block (N,R,128) + wd block (R,128).
    bytes_per_row = 2 * (n_batch + 1) * _LANE * 4
    max_rows = max(_SUBLANE,
                   (vmem_budget_bytes // bytes_per_row) // _SUBLANE * _SUBLANE)

    # Preferred: exact tiling, large blocks, small grid.  kt == 2 first so the
    # leading "parallel" axis can feed both v7x TensorCores.
    for kt in (2, 1, 4, 6, 8, 12, 16, 24, 32, 48, 64, 96, 128):
        if dr % kt:
            continue
        r = dr // kt
        if r > max_rows or (kt > 1 and r % _SUBLANE):
            continue
        return r, dr, kt

    # Fallback: budget-sized blocks with a zero-padded tail (single pad copy in
    # the wrapper).  Keep KT even so the parallel split stays usable.
    kt = pl.cdiv(dr, max_rows)
    if kt % 2:
        kt += 1
    r = _round_up(pl.cdiv(dr, kt), _SUBLANE)
    return r, kt * r, kt


def _adv_partial_kernel(x_ref, wd_ref, o_ref, *, n_batch):
    """Per-batch partial dot products of the recon against w_delta.

    x_ref : (N, R, 128) f32   lane/sublane-dense activation tile
    wd_ref: (R, 128)    f32   matching w_delta tile
    o_ref : (N, 128)    f32   per-batch partial sums for this K-half
                              (resident/accumulated across the reduction axis)
    """
    k = pl.program_id(1)

    @pl.when(k == 0)
    def _():
        o_ref[...] = jnp.zeros_like(o_ref)

    wd = wd_ref[...]                                  # (R, 128)
    for b in range(n_batch):                          # static unroll; batch tiny
        o_ref[b:b + 1, :] += jnp.sum(x_ref[b] * wd, axis=0, keepdims=True)


def pack_discriminator(disc_w, disc_b):
    """One-time packing of the (D, 2) linear discriminator: only the logit
    difference matters for the 2-class softmax, so keep a single D-vector."""
    w_delta = (disc_w[:, 1] - disc_w[:, 0]).astype(jnp.float32)
    b_delta = (disc_b[1] - disc_b[0]).astype(jnp.float32)
    return w_delta, b_delta


def adv_loss_pallas(recon, w_delta, b_delta, laplacian_level_count,
                    *, rows_per_block=None):
    """recon: (N, C, H, W); w_delta: (D,) f32; b_delta: () f32."""
    n, c, h, w = recon.shape
    d = c * h * w
    assert n > 0, "empty batch would divide by zero (matches torch mean)"

    dr = pl.cdiv(d, _LANE)
    r, drp, kt = _choose_tiling(n, dr, rows_per_block)
    dp = drp * _LANE
    p = 2 if (kt >= 2 and kt % 2 == 0) else 1         # parallel K halves (v7x)
    kth = kt // p

    x = recon.reshape(n, d).astype(jnp.float32)       # no dtype copy; f32 in
    wd = w_delta.astype(jnp.float32)
    if dp != d:
        # TODO(synk): a masked tail block would avoid this one-time pad copy
        # when D is not a multiple of 128 * R.
        x = jnp.pad(x, ((0, 0), (0, dp - d)))
        wd = jnp.pad(wd, (0, dp - d))
    x3 = x.reshape(n, drp, _LANE)                     # lane/sublane-dense view
    wd3 = wd.reshape(drp, _LANE)

    kernel = functools.partial(_adv_partial_kernel, n_batch=n)
    partial = pl.pallas_call(
        kernel,
        out_shape=jax.ShapeDtypeStruct((p, n, _LANE), jnp.float32),
        grid=(p, kth),
        in_specs=[
            pl.BlockSpec((n, r, _LANE), lambda pi, ki: (0, pi * kth + ki, 0)),
            pl.BlockSpec((r, _LANE), lambda pi, ki: (pi * kth + ki, 0)),
        ],
        out_specs=pl.BlockSpec((None, n, _LANE), lambda pi, ki: (pi, 0, 0)),
        compiler_params=pltpu.CompilerParams(
            dimension_semantics=("parallel", "arbitrary"),
            vmem_limit_bytes=32 * 1024 * 1024),
        cost_estimate=pl.CostEstimate(
            flops=2 * n * dp,
            transcendentals=0,
            bytes_accessed=(n + 1) * dp * 4 + p * n * _LANE * 4),
    )(x3, wd3)

    # Tiny O(N) epilogue (off the critical path): combine the parallel halves,
    # 2-class softmax closed form, log, mean.
    delta = jnp.sum(partial, axis=(0, 2)) + b_delta   # (N,) = l1 - l0
    p1 = jax.nn.sigmoid(delta)                        # == softmax(logits)[:, 1]
    scale = -3.0 * h * w * laplacian_level_count
    return jnp.mean(scale * jnp.log(p1 + 1e-9))


def adv_loss_reference(recon, disc_w, disc_b, laplacian_level_count):
    """Plain-JAX f32 reference mirroring the PyTorch forward."""
    n, c, h, w = recon.shape
    x = recon.reshape(n, -1).astype(jnp.float32)
    logits = jnp.dot(x, disc_w.astype(jnp.float32),
                     precision=jax.lax.Precision.HIGHEST)
    logits = logits + disc_b.astype(jnp.float32)
    prob = jax.nn.softmax(logits, axis=1)
    return jnp.mean(-3 * h * w * laplacian_level_count *
                    jnp.log(prob[:, 1] + 1e-9))


if __name__ == "__main__":
    key = jax.random.PRNGKey(0)
    k_recon, k_recon2, k_w, k_b = jax.random.split(key, 4)

    LAPLACIAN_LEVELS = 3

    def run_case(recon, disc_w, disc_b, **kw):
        w_delta, b_delta = pack_discriminator(disc_w, disc_b)
        loss = jax.block_until_ready(
            adv_loss_pallas(recon, w_delta, b_delta, LAPLACIAN_LEVELS, **kw))
        ref = adv_loss_reference(recon, disc_w, disc_b, LAPLACIAN_LEVELS)
        assert jnp.allclose(loss, ref, rtol=1e-3, atol=1e-3), (loss, ref)
        return loss

    # Case 1: small shape from the module; single dense block, grid (1, 1).
    # TODO(synk): the external discriminator is an arbitrary nn.Module; it is
    # modeled here as a linear C*H*W -> 2 head (its parameters are inputs).
    N, C, H, W = 2, 4, 16, 16
    D = C * H * W
    recon = jax.random.normal(k_recon, (N, C, H, W), jnp.float32)
    disc_w = jax.random.normal(k_w, (D, _NUM_CLASSES), jnp.float32) * 0.02
    disc_b = jax.random.normal(k_b, (_NUM_CLASSES,), jnp.float32) * 0.02
    run_case(recon, disc_w, disc_b)

    # Case 2: larger D -> exercises the 2-way parallel K split (grid (2, 1)).
    N2, C2, H2, W2 = 2, 4, 32, 32
    D2 = C2 * H2 * W2
    recon2 = jax.random.normal(k_recon2, (N2, C2, H2, W2), jnp.float32)
    disc_w2 = jax.random.normal(k_w, (D2, _NUM_CLASSES), jnp.float32) * 0.02
    disc_b2 = jax.random.normal(k_b, (_NUM_CLASSES,), jnp.float32) * 0.02
    run_case(recon2, disc_w2, disc_b2)

    # Same shape, forced small blocks -> exercises the k==0 init / k>0
    # accumulation path on a (2, 2) grid.
    run_case(recon2, disc_w2, disc_b2, rows_per_block=8)

    print("KERNEL_OK")
</pallas_src>

<mosaic_0001>
module attributes {stable_mosaic.version = 11 : i64} {
  func.func @_adv_partial_kernel(%arg0: i32, %arg1: i32, %arg2: memref<2x8x128xf32, #tpu.memory_space<vmem>>, %arg3: memref<8x128xf32, #tpu.memory_space<vmem>>, %arg4: memref<1x2x128xf32, #tpu.memory_space<vmem>>) attributes {dimension_semantics = [#tpu.dimension_semantics<parallel>, #tpu.dimension_semantics<arbitrary>], iteration_bounds = array<i64: 1, 1>, scalar_prefetch = 0 : i64, scratch_operands = 0 : i64, tpu.core_type = #tpu.core_type<tc>, window_params = [{transform_indices = @transform_0, window_bounds = array<i64: 2, 8, 128>}, {transform_indices = @transform_1, window_bounds = array<i64: 8, 128>}, {transform_indices = @transform_2, window_bounds = array<i64: 1, 2, 128>}]} {
    %c0_i32 = arith.constant 0 : i32
    %0 = arith.cmpi eq, %arg1, %c0_i32 : i32
    %1 = arith.extui %0 : i1 to i32
    %c0_i32_0 = arith.constant 0 : i32
    %2 = arith.cmpi ne, %1, %c0_i32_0 : i32
    scf.if %2 {
      %cst_20 = arith.constant 0.000000e+00 : f32
      %26 = vector.broadcast %cst_20 : f32 to vector<2x128xf32>
      %c0_21 = arith.constant 0 : index
      %c0_22 = arith.constant 0 : index
      %c0_23 = arith.constant 0 : index
      %27 = vector.load %arg4[%c0_21, %c0_22, %c0_23] : memref<1x2x128xf32, #tpu.memory_space<vmem>>, vector<1x2x128xf32>
      %28 = vector.shape_cast %27 : vector<1x2x128xf32> to vector<2x128xf32>
      %29 = vector.shape_cast %26 : vector<2x128xf32> to vector<1x2x128xf32>
      tpu.vector_store %arg4[%c0_21, %c0_22, %c0_23], %29 {strides = array<i32>} : memref<1x2x128xf32, #tpu.memory_space<vmem>>, vector<1x2x128xf32>,
    } else {
    }
    %c0 = arith.constant 0 : index
    %c0_1 = arith.constant 0 : index
    %3 = vector.load %arg3[%c0, %c0_1] : memref<8x128xf32, #tpu.memory_space<vmem>>, vector<8x128xf32>
    %c0_2 = arith.constant 0 : index
    %c0_3 = arith.constant 0 : index
    %c0_4 = arith.constant 0 : index
    %4 = vector.load %arg4[%c0_2, %c0_3, %c0_4] : memref<1x2x128xf32, #tpu.memory_space<vmem>>, vector<1x1x128xf32>
    %5 = vector.shape_cast %4 : vector<1x1x128xf32> to vector<1x128xf32>
    %c0_5 = arith.constant 0 : index
    %c0_6 = arith.constant 0 : index
    %c0_7 = arith.constant 0 : index
    %6 = vector.load %arg2[%c0_5, %c0_6, %c0_7] : memref<2x8x128xf32, #tpu.memory_space<vmem>>, vector<1x8x128xf32>
    %7 = vector.shape_cast %6 : vector<1x8x128xf32> to vector<8x128xf32>
    %8 = arith.mulf %7, %3 : vector<8x128xf32>
    %cst = arith.constant dense<0.000000e+00> : vector<128xf32>
    %9 = vector.multi_reduction <add>, %8, %cst [0] : vector<8x128xf32> to vector<128xf32>
    %10 = vector.shape_cast %9 : vector<128xf32> to vector<1x128xf32>
    %11 = arith.addf %5, %10 : vector<1x128xf32>
    %c0_8 = arith.constant 0 : index
    %c0_9 = arith.constant 0 : index
    %c0_10 = arith.constant 0 : index
    %12 = vector.load %arg4[%c0_8, %c0_9, %c0_10] : memref<1x2x128xf32, #tpu.memory_space<vmem>>, vector<1x1x128xf32>
    %13 = vector.shape_cast %12 : vector<1x1x128xf32> to vector<1x128xf32>
    %14 = vector.shape_cast %11 : vector<1x128xf32> to vector<1x1x128xf32>
    tpu.vector_store %arg4[%c0_8, %c0_9, %c0_10], %14 {strides = array<i32>} : memref<1x2x128xf32, #tpu.memory_space<vmem>>, vector<1x1x128xf32>,
    %c0_11 = arith.constant 0 : index
    %c1 = arith.constant 1 : index
    %c0_12 = arith.constant 0 : index
    %15 = vector.load %arg4[%c0_11, %c1, %c0_12] : memref<1x2x128xf32, #tpu.memory_space<vmem>>, vector<1x1x128xf32>
    %16 = vector.shape_cast %15 : vector<1x1x128xf32> to vector<1x128xf32>
    %c1_13 = arith.constant 1 : index
    %c0_14 = arith.constant 0 : index
    %c0_15 = arith.constant 0 : index
    %17 = vector.load %arg2[%c1_13, %c0_14, %c0_15] : memref<2x8x128xf32, #tpu.memory_space<vmem>>, vector<1x8x128xf32>
    %18 = vector.shape_cast %17 : vector<1x8x128xf32> to vector<8x128xf32>
    %19 = arith.mulf %18, %3 : vector<8x128xf32>
    %cst_16 = arith.constant dense<0.000000e+00> : vector<128xf32>
    %20 = vector.multi_reduction <add>, %19, %cst_16 [0] : vector<8x128xf32> to vector<128xf32>
    %21 = vector.shape_cast %20 : vector<128xf32> to vector<1x128xf32>
    %22 = arith.addf %16, %21 : vector<1x128xf32>
    %c0_17 = arith.constant 0 : index
    %c1_18 = arith.constant 1 : index
    %c0_19 = arith.constant 0 : index
    %23 = vector.load %arg4[%c0_17, %c1_18, %c0_19] : memref<1x2x128xf32, #tpu.memory_space<vmem>>, vector<1x1x128xf32>
    %24 = vector.shape_cast %23 : vector<1x1x128xf32> to vector<1x128xf32>
    %25 = vector.shape_cast %22 : vector<1x128xf32> to vector<1x1x128xf32>
    tpu.vector_store %arg4[%c0_17, %c1_18, %c0_19], %25 {strides = array<i32>} : memref<1x2x128xf32, #tpu.memory_space<vmem>>, vector<1x1x128xf32>,
    return
  }
  func.func @transform_0(%arg0: i32, %arg1: i32) -> (i32, i32, i32) {
    %c1_i32 = arith.constant 1 : i32
    %0 = arith.muli %arg0, %c1_i32 : i32
    %1 = arith.addi %0, %arg1 : i32
    %c0_i32 = arith.constant 0 : i32
    %c0_i32_0 = arith.constant 0 : i32
    %c0_i32_1 = arith.constant 0 : i32
    return %c0_i32, %1, %c0_i32_0 : i32, i32, i32
  }
  func.func @transform_1(%arg0: i32, %arg1: i32) -> (i32, i32) {
    %c1_i32 = arith.constant 1 : i32
    %0 = arith.muli %arg0, %c1_i32 : i32
    %1 = arith.addi %0, %arg1 : i32
    %c0_i32 = arith.constant 0 : i32
    %c0_i32_0 = arith.constant 0 : i32
    return %1, %c0_i32 : i32, i32
  }
  func.func @transform_2(%arg0: i32, %arg1: i32) -> (i32, i32, i32) {
    %c0_i32 = arith.constant 0 : i32
    %c0_i32_0 = arith.constant 0 : i32
    %c0_i32_1 = arith.constant 0 : i32
    return %arg0, %c0_i32, %c0_i32_0 : i32, i32, i32
  }
}

</mosaic_0001>

<bundles_post_ra>
// kernel: tpu_custom_call.1
= control target key start
LH: loop header
LB: loop body
LE: loop exit
PB: predicated region body
PF: predicated region fallthrough
CT: control target
= control target key end

     0   :  { %7 = vsyncpa [#allocation3], 0  ;;  %s211_s0 = inlined_call_operand.hbm [shape: f32[2,8,128], index: 0, kind: input, shape index: {}]   ;;  %s212_s1 = inlined_call_operand.hbm [shape: f32[8,128], index: 1, kind: input, shape index: {}]   ;;  %s213_s2 = inlined_call_operand.hbm [shape: f32[1,2,128], index: 2, kind: output, shape index: {}]  }
   0x1   :  { %8 = vsyncpa [#allocation6], 0 }
   0x2   :  { %9 = vsyncpa [#allocation4], 0  ;;  %s17_s11 = sshll.u32 %s211_s0, 4  ;;  %s181_s12 = smov [#allocation2]   ;;  %s18_s11 = int_to_ptr.hbm [resolvable:$true] %s17_s11 }
   0x3   :  { %s19_s13 = sshll.u32 %s181_s12, 4  ;;  %s34_s16 = sshll.u32 %s212_s1, 4  ;;  %s20_s13 = int_to_ptr.vmem [resolvable:$true] %s19_s13  ;;  %s35_s16 = int_to_ptr.hbm [resolvable:$true] %s34_s16 }
   0x4   :  { %s182_s17 = smov 128   ;;  %s183_s18 = smov 8  }
   0x5   :  { %25 = dma.hbm_to_vmem [thread:$0]  %s18_s11, 256, %s20_s13, [#allocation3], %s182_s17, %s182_s17, %s183_s18  }
   0x6   :  { %s184_s19 = smov [#allocation5]  }
   0x7   :  { %s36_s20 = sshll.u32 %s184_s19, 4  ;;  %s37_s20 = int_to_ptr.vmem [resolvable:$true] %s36_s20 }
   0x8   :  { %39 = dma.hbm_to_vmem [thread:$0]  %s35_s16, 128, %s37_s20, [#allocation6]  }
   0x9   :  { %175 = dma.done.wait [#allocation3], 256  }
   0xa   :  { %176 = vsyncadd [#allocation3], 4294967040 }
   0xb   :  { %177 = dma.done.wait [#allocation6], 128  }
   0xc   :  { %178 = vsyncadd [#allocation6], 4294967168  ;;  %v185_v0 = vmov 0.0   ;;  %v55_v1 = vld [vmem:[#allocation5] sm:$0xff]  ;;  %v57_v2 = vld [vmem:[#allocation2] sm:$0xff]  ;;  %s186_s0 = smov [#allocation7]  }
   0xd   :  { %54 = vst [vmem:[#allocation7] sm:$0x3] %v185_v0  ;;  %v69_v3 = vld [vmem:[#allocation2 + $0x8] sm:$0xff]  ;;  %v58_v4 = vmul.f32 %v57_v2, %v55_v1  ;;  %s84_s1 = sshll.u32 %s186_s0, 4  ;;  %s86_s23 = sshll.u32 %s213_s2, 4  ;;  %s85_s1 = int_to_ptr.vmem [resolvable:$true] %s84_s1  ;;  %s87_s23 = int_to_ptr.hbm [resolvable:$true] %s86_s23 }
   0xe   :  { %v70_v5 = vmul.f32 %v69_v3, %v55_v1 }
   0xf   :  { %v59_v6 = vrot.slane %v58_v4, 4 }
  0x10   :  { %v71_v7 = vrot.slane %v70_v5, 4 }
  0x11   :  { %v60_v8 = vadd.f32 %v59_v6, %v58_v4 }
  0x12   :  { %v72_v9 = vadd.f32 %v71_v7, %v70_v5 }
  0x13   :  { %v61_v10 = vrot.slane %v60_v8, 2 }
  0x14   :  { %v73_v11 = vrot.slane %v72_v9, 2  ;;  %v56_v16 = vld [vmem:[#allocation7] sm:$0x1]  ;;  %v67_v17 = vld [vmem:[#allocation7 + $0x1] sm:$0x1] }
  0x15   :  { %v62_v12 = vadd.f32 %v61_v10, %v60_v8 }
  0x16   :  { %v74_v13 = vadd.f32 %v73_v11, %v72_v9 }
  0x17   :  { %v63_v14 = vrot.slane %v62_v12, 1 }
  0x18   :  { %v75_v15 = vrot.slane %v74_v13, 1 }
  0x19   :  { %v64_v18 = vadd.f32 %v63_v14, %v62_v12 }
  0x1a   :  { %v76_v19 = vadd.f32 %v75_v15, %v74_v13 }
  0x1b   :  { %v65_v20 = vadd.f32 %v64_v18, %v56_v16 }
  0x1c   :  { %v77_v21 = vadd.f32 %v76_v19, %v67_v17 }
  0x1d   :  { %66 = vst [vmem:[#allocation7] sm:$0x1] %v65_v20 }
  0x1e   :  { %78 = vst [vmem:[#allocation7 + $0x1] sm:$0x1] %v77_v21 }
  0x1f   :  { %89 = dma.vmem_to_hbm [thread:$0]  %s85_s1, 32, %s87_s23, [#allocation4]  }
  0x20   :  { %179 = dma.done.wait [#allocation4], 32  }
  0x21   :  { %180 = vsyncadd [#allocation4], 4294967264 }
  0x22   :  { %94 = vsyncpa [#allocation3], 1 }
  0x23   :  { %95 = vsyncpa [#allocation6], 1 }
  0x24   :  { %96 = vsyncpa [#allocation4], 1 }

</bundles_post_ra>
